<compile_context>
chip_gen: v5e
topology: v5e:2x2
jax: 0.10.0
libtpu: 0.0.40
codegen_flags: <defaults>
</compile_context>

<pallas_src>
import functools

import numpy as np
import jax
import jax.numpy as jnp
from jax.experimental import pallas as pl
from jax.experimental.pallas import tpu as pltpu

_K = 3        # conv kernel size
_C1 = 32      # conv1 out channels
_C2 = 128     # conv2 out channels
_FC1 = 64     # fc hidden width
_H = 7        # input spatial size implied by Linear(128, ...) after the conv/pool stack
_LANE = 128   # lane width used for all kernel operands and the output

# Packed weight-slab layout (all rows are 128 f32 lanes):
_W2_ROWS = _K * _K * _C1         # rows [0, 288): conv2 taps, tap t = rows [t*32, (t+1)*32)
_FW12_OFF = _W2_ROWS             # rows [288, 416): fused fc1@fc2 weight (128, 128)
_B2_ROW = _FW12_OFF + _LANE      # row 416: conv2 bias
_FB12_ROW = _B2_ROW + 8          # row 424: fused fc bias (kept 8-row aligned)
_SLAB_ROWS = _FB12_ROW + 8       # 432 rows total


def _fused_forward_kernel(x1e_ref, w1_ref, slab_ref, o_ref, *, B):
    """Whole forward pass; every intermediate is an SSA value (vregs), no scratch."""
    R = 4 * B              # rows per conv2 tap block: 4 output positions x batch
    S = _K * _K * R        # rows per pool1 (dy, dx) slab

    # conv1 (+bias, folded into the ones-lane of x1e / bias row of w1) + ReLU.
    c1 = jnp.maximum(
        jnp.dot(x1e_ref[...], w1_ref[...], preferred_element_type=jnp.float32), 0.0)

    # pool1 (k=2, s=1): elementwise max over the four (dy, dx) slabs -> (S, 32).
    p1 = jnp.maximum(jnp.maximum(c1[0 * S:1 * S], c1[1 * S:2 * S]),
                     jnp.maximum(c1[2 * S:3 * S], c1[3 * S:4 * S]))

    # conv2: 9 shifted-window matmuls accumulated in f32 (tap slices are 8-row aligned).
    acc = jnp.dot(p1[0:R], slab_ref[0:_C1, :], preferred_element_type=jnp.float32)
    for t in range(1, _K * _K):
        acc = acc + jnp.dot(p1[t * R:(t + 1) * R],
                            slab_ref[t * _C1:(t + 1) * _C1, :],
                            preferred_element_type=jnp.float32)
    c2 = jnp.maximum(acc + slab_ref[_B2_ROW:_B2_ROW + 1, :], 0.0)    # (4B, 128)

    # pool2 (k=2, s=2 over the 2x2 conv2 output): max over the 4 position blocks.
    feat = jnp.maximum(jnp.maximum(c2[0 * B:1 * B], c2[1 * B:2 * B]),
                       jnp.maximum(c2[2 * B:3 * B], c2[3 * B:4 * B]))  # (B, 128)

    # fused fc1 @ fc2 (template has no activation between the two Linear layers).
    logits = (jnp.dot(feat, slab_ref[_FW12_OFF:_FW12_OFF + _LANE, :],
                      preferred_element_type=jnp.float32)
              + slab_ref[_FB12_ROW:_FB12_ROW + 1, :])
    o_ref[...] = logits.astype(o_ref.dtype)       # single lane-dense HBM store


def _full_spec(shape):
    """BlockSpec covering the whole array (grid=(1,))."""
    return pl.BlockSpec(shape, lambda *_: (0,) * len(shape))


@functools.partial(jax.jit, static_argnames=("n_output_classes",))
def my_network_forward(params, x_nchw, n_output_classes):
    assert n_output_classes <= _LANE, "logits are padded to 128 lanes"
    B, Cin, H, W = x_nchw.shape
    assert (H, W) == (_H, _H), (H, W)
    K1 = _K * _K * Cin
    assert K1 + 1 <= _LANE, "im2col patch (+bias lane) must fit in 128 lanes"

    H1 = _H - _K + 1       # 5: conv1 output spatial
    x = jnp.transpose(x_nchw, (0, 2, 3, 1)).astype(jnp.float32)        # NHWC

    # ---- conv1 im2col in the wrapper (XLA), expanded & reordered so that every later
    # ---- stage of the kernel is a contiguous aligned row-slice of an SSA value.
    # patches[b, h, w, :] = flattened 3x3 window at conv1 output position (h, w), plus a
    # ones-lane (folds conv1 bias into the matmul) and zero lane-padding to 128 lanes.
    patches = jnp.concatenate(
        [x[:, u:u + H1, v:v + H1, :] for u in range(_K) for v in range(_K)], axis=-1)
    patches = jnp.concatenate(
        [patches,
         jnp.ones((B, H1, H1, 1), jnp.float32),
         jnp.zeros((B, H1, H1, _LANE - K1 - 1), jnp.float32)], axis=-1)  # (B,5,5,128)

    # Row ordering of the expanded im2col:
    #   slab (dy,dx)   pool1 window offset  -> maxed elementwise in-kernel (pool1)
    #     tap (kh,kw)  conv2 kernel offset  -> one aligned slice per conv2 tap matmul
    #       p=(oh,ow)  conv2 output pos     -> maxed in-kernel (pool2)
    #         b        batch (innermost)
    rb, rh, rw = [], [], []
    for dy in range(2):
        for dx in range(2):
            for kh in range(_K):
                for kw in range(_K):
                    for p in range(4):
                        oh, ow = divmod(p, 2)
                        for b in range(B):
                            rb.append(b)
                            rh.append(oh + kh + dy)
                            rw.append(ow + kw + dx)
    x1e = patches[np.array(rb), np.array(rh), np.array(rw), :]          # (144*B, 128)
    n_rows = 4 * _K * _K * 4 * B

    # ---- weight slab A: conv1 weights + bias row, zero-padded to 128 rows -----------
    w1_slab = jnp.concatenate(
        [params["conv1_w"].reshape(K1, _C1).astype(jnp.float32),
         params["conv1_b"].reshape(1, _C1).astype(jnp.float32),
         jnp.zeros((_LANE - K1 - 1, _C1), jnp.float32)], axis=0)         # (128, 32)

    # ---- weight slab B: conv2 taps + fused fc1@fc2 + biases --------------------------
    w2_flat = params["conv2_w"].reshape(_W2_ROWS, _C2).astype(jnp.float32)   # (288,128)
    fw2p = jnp.zeros((_FC1, _LANE), jnp.float32).at[:, :n_output_classes].set(
        params["fc2_w"].astype(jnp.float32))
    fb2p = jnp.zeros((_LANE,), jnp.float32).at[:n_output_classes].set(
        params["fc2_b"].astype(jnp.float32))
    fw12 = params["fc1_w"].astype(jnp.float32) @ fw2p                        # (128,128)
    fb12 = params["fc1_b"].astype(jnp.float32) @ fw2p + fb2p                 # (128,)
    slab = jnp.zeros((_SLAB_ROWS, _LANE), jnp.float32)
    slab = slab.at[0:_W2_ROWS].set(w2_flat)
    slab = slab.at[_FW12_OFF:_FW12_OFF + _LANE].set(fw12)
    slab = slab.at[_B2_ROW].set(params["conv2_b"].astype(jnp.float32))
    slab = slab.at[_FB12_ROW].set(fb12)

    padded = pl.pallas_call(
        functools.partial(_fused_forward_kernel, B=B),
        out_shape=jax.ShapeDtypeStruct((B, _LANE), jnp.float32),
        grid_spec=pltpu.PrefetchScalarGridSpec(
            num_scalar_prefetch=0,
            grid=(1,),
            in_specs=[_full_spec((n_rows, _LANE)),
                      _full_spec((_LANE, _C1)),
                      _full_spec((_SLAB_ROWS, _LANE))],
            out_specs=_full_spec((B, _LANE)),
        ),
        compiler_params=pltpu.CompilerParams(
            dimension_semantics=("arbitrary",)),
    )(x1e, w1_slab, slab)

    return padded[:, :n_output_classes]


def init_params(key, n_input_channels, n_output_classes):
    ks = jax.random.split(key, 8)
    scale = 0.1
    return {
        "conv1_w": scale * jax.random.normal(ks[0], (3, 3, n_input_channels, _C1), jnp.float32),
        "conv1_b": scale * jax.random.normal(ks[1], (_C1,), jnp.float32),
        "conv2_w": scale * jax.random.normal(ks[2], (3, 3, _C1, _C2), jnp.float32),
        "conv2_b": scale * jax.random.normal(ks[3], (_C2,), jnp.float32),
        "fc1_w":   scale * jax.random.normal(ks[4], (_C2, _FC1), jnp.float32),
        "fc1_b":   scale * jax.random.normal(ks[5], (_FC1,), jnp.float32),
        "fc2_w":   scale * jax.random.normal(ks[6], (_FC1, n_output_classes), jnp.float32),
        "fc2_b":   scale * jax.random.normal(ks[7], (n_output_classes,), jnp.float32),
    }


def _reference_forward(params, x_nchw, n_output_classes):
    """Pure-JAX reference of the intended forward (for correctness checking)."""
    hp = jax.lax.Precision.HIGHEST
    x = jnp.transpose(x_nchw, (0, 2, 3, 1)).astype(jnp.float32)
    y = jax.lax.conv_general_dilated(
        x, params["conv1_w"].astype(jnp.float32), (1, 1), "VALID",
        dimension_numbers=("NHWC", "HWIO", "NHWC"), precision=hp) + params["conv1_b"]
    y = jnp.maximum(y, 0.0)
    y = jax.lax.reduce_window(y, -jnp.inf, jax.lax.max, (1, 2, 2, 1), (1, 1, 1, 1), "VALID")
    y = jax.lax.conv_general_dilated(
        y, params["conv2_w"].astype(jnp.float32), (1, 1), "VALID",
        dimension_numbers=("NHWC", "HWIO", "NHWC"), precision=hp) + params["conv2_b"]
    y = jnp.maximum(y, 0.0)
    y = jax.lax.reduce_window(y, -jnp.inf, jax.lax.max, (1, 2, 2, 1), (1, 2, 2, 1), "VALID")
    feat = y.reshape(y.shape[0], -1)                                     # (B, 128)
    h = jnp.dot(feat, params["fc1_w"], precision=hp) + params["fc1_b"]
    return jnp.dot(h, params["fc2_w"], precision=hp) + params["fc2_b"]


if __name__ == "__main__":
    B, CIN, H, W = 2, 4, 7, 7     # 7x7 spatial is what the template's Linear(128,...) implies
    N_CLASSES = 10

    key = jax.random.PRNGKey(0)
    k_in, k_params = jax.random.split(key)
    x = jax.random.normal(k_in, (B, CIN, H, W), jnp.float32)   # NCHW, PyTorch-style
    params = init_params(k_params, CIN, N_CLASSES)

    logits = jax.block_until_ready(my_network_forward(params, x, N_CLASSES))
    assert logits.shape == (B, N_CLASSES), logits.shape
    assert logits.dtype == jnp.float32

    ref = _reference_forward(params, x, N_CLASSES)
    assert jnp.allclose(logits, ref, rtol=1e-2, atol=1e-2), (logits, ref)
    print("KERNEL_OK")
</pallas_src>

<mosaic_0001>
module attributes {stable_mosaic.version = 11 : i64} {
  func.func @_fused_forward_kernel(%arg0: i32, %arg1: memref<288x128xf32, #tpu.memory_space<vmem>>, %arg2: memref<128x32xf32, #tpu.memory_space<vmem>>, %arg3: memref<432x128xf32, #tpu.memory_space<vmem>>, %arg4: memref<2x128xf32, #tpu.memory_space<vmem>>) attributes {dimension_semantics = [#tpu.dimension_semantics<arbitrary>], iteration_bounds = array<i64: 1>, scalar_prefetch = 0 : i64, scratch_operands = 0 : i64, tpu.core_type = #tpu.core_type<tc>, window_params = [{pipeline_mode = #tpu.pipeline_mode<synchronous>, transform_indices = @transform_0, window_bounds = array<i64: 288, 128>}, {pipeline_mode = #tpu.pipeline_mode<synchronous>, transform_indices = @transform_1, window_bounds = array<i64: 128, 32>}, {pipeline_mode = #tpu.pipeline_mode<synchronous>, transform_indices = @transform_2, window_bounds = array<i64: 432, 128>}, {pipeline_mode = #tpu.pipeline_mode<synchronous>, transform_indices = @transform_3, window_bounds = array<i64: 2, 128>}]} {
    %c0 = arith.constant 0 : index
    %c0_0 = arith.constant 0 : index
    %0 = vector.load %arg1[%c0, %c0_0] : memref<288x128xf32, #tpu.memory_space<vmem>>, vector<288x128xf32>
    %c0_1 = arith.constant 0 : index
    %c0_2 = arith.constant 0 : index
    %1 = vector.load %arg2[%c0_1, %c0_2] : memref<128x32xf32, #tpu.memory_space<vmem>>, vector<128x32xf32>
    %cst = arith.constant dense<0.000000e+00> : vector<288x32xf32>
    %2 = tpu.matmul %0, %1, %cst {dimension_numbers = #tpu.dot_dimension_numbers<[1], [0], [0], [1], [0, 0, 1, 1], [], []>} : vector<288x128xf32>, vector<128x32xf32>, vector<288x32xf32> -> vector<288x32xf32>
    %cst_3 = arith.constant 0.000000e+00 : f32
    %3 = vector.broadcast %cst_3 : f32 to vector<288x32xf32>
    %4 = arith.maximumf %2, %3 : vector<288x32xf32>
    %5 = vector.extract_strided_slice %4 {offsets = [0, 0], sizes = [72, 32], strides = [1, 1]} : vector<288x32xf32> to vector<72x32xf32>
    %6 = vector.extract_strided_slice %4 {offsets = [72, 0], sizes = [72, 32], strides = [1, 1]} : vector<288x32xf32> to vector<72x32xf32>
    %7 = arith.maximumf %5, %6 : vector<72x32xf32>
    %8 = vector.extract_strided_slice %4 {offsets = [144, 0], sizes = [72, 32], strides = [1, 1]} : vector<288x32xf32> to vector<72x32xf32>
    %9 = vector.extract_strided_slice %4 {offsets = [216, 0], sizes = [72, 32], strides = [1, 1]} : vector<288x32xf32> to vector<72x32xf32>
    %10 = arith.maximumf %8, %9 : vector<72x32xf32>
    %11 = arith.maximumf %7, %10 : vector<72x32xf32>
    %12 = vector.extract_strided_slice %11 {offsets = [0, 0], sizes = [8, 32], strides = [1, 1]} : vector<72x32xf32> to vector<8x32xf32>
    %c0_4 = arith.constant 0 : index
    %c0_5 = arith.constant 0 : index
    %13 = vector.load %arg3[%c0_4, %c0_5] : memref<432x128xf32, #tpu.memory_space<vmem>>, vector<32x128xf32>
    %cst_6 = arith.constant dense<0.000000e+00> : vector<8x128xf32>
    %14 = tpu.matmul %12, %13, %cst_6 {dimension_numbers = #tpu.dot_dimension_numbers<[1], [0], [0], [1], [0, 0, 1, 1], [], []>} : vector<8x32xf32>, vector<32x128xf32>, vector<8x128xf32> -> vector<8x128xf32>
    %15 = vector.extract_strided_slice %11 {offsets = [8, 0], sizes = [8, 32], strides = [1, 1]} : vector<72x32xf32> to vector<8x32xf32>
    %c32 = arith.constant 32 : index
    %c0_7 = arith.constant 0 : index
    %16 = vector.load %arg3[%c32, %c0_7] : memref<432x128xf32, #tpu.memory_space<vmem>>, vector<32x128xf32>
    %cst_8 = arith.constant dense<0.000000e+00> : vector<8x128xf32>
    %17 = tpu.matmul %15, %16, %cst_8 {dimension_numbers = #tpu.dot_dimension_numbers<[1], [0], [0], [1], [0, 0, 1, 1], [], []>} : vector<8x32xf32>, vector<32x128xf32>, vector<8x128xf32> -> vector<8x128xf32>
    %18 = arith.addf %14, %17 : vector<8x128xf32>
    %19 = vector.extract_strided_slice %11 {offsets = [16, 0], sizes = [8, 32], strides = [1, 1]} : vector<72x32xf32> to vector<8x32xf32>
    %c64 = arith.constant 64 : index
    %c0_9 = arith.constant 0 : index
    %20 = vector.load %arg3[%c64, %c0_9] : memref<432x128xf32, #tpu.memory_space<vmem>>, vector<32x128xf32>
    %cst_10 = arith.constant dense<0.000000e+00> : vector<8x128xf32>
    %21 = tpu.matmul %19, %20, %cst_10 {dimension_numbers = #tpu.dot_dimension_numbers<[1], [0], [0], [1], [0, 0, 1, 1], [], []>} : vector<8x32xf32>, vector<32x128xf32>, vector<8x128xf32> -> vector<8x128xf32>
    %22 = arith.addf %18, %21 : vector<8x128xf32>
    %23 = vector.extract_strided_slice %11 {offsets = [24, 0], sizes = [8, 32], strides = [1, 1]} : vector<72x32xf32> to vector<8x32xf32>
    %c96 = arith.constant 96 : index
    %c0_11 = arith.constant 0 : index
    %24 = vector.load %arg3[%c96, %c0_11] : memref<432x128xf32, #tpu.memory_space<vmem>>, vector<32x128xf32>
    %cst_12 = arith.constant dense<0.000000e+00> : vector<8x128xf32>
    %25 = tpu.matmul %23, %24, %cst_12 {dimension_numbers = #tpu.dot_dimension_numbers<[1], [0], [0], [1], [0, 0, 1, 1], [], []>} : vector<8x32xf32>, vector<32x128xf32>, vector<8x128xf32> -> vector<8x128xf32>
    %26 = arith.addf %22, %25 : vector<8x128xf32>
    %27 = vector.extract_strided_slice %11 {offsets = [32, 0], sizes = [8, 32], strides = [1, 1]} : vector<72x32xf32> to vector<8x32xf32>
    %c128 = arith.constant 128 : index
    %c0_13 = arith.constant 0 : index
    %28 = vector.load %arg3[%c128, %c0_13] : memref<432x128xf32, #tpu.memory_space<vmem>>, vector<32x128xf32>
    %cst_14 = arith.constant dense<0.000000e+00> : vector<8x128xf32>
    %29 = tpu.matmul %27, %28, %cst_14 {dimension_numbers = #tpu.dot_dimension_numbers<[1], [0], [0], [1], [0, 0, 1, 1], [], []>} : vector<8x32xf32>, vector<32x128xf32>, vector<8x128xf32> -> vector<8x128xf32>
    %30 = arith.addf %26, %29 : vector<8x128xf32>
    %31 = vector.extract_strided_slice %11 {offsets = [40, 0], sizes = [8, 32], strides = [1, 1]} : vector<72x32xf32> to vector<8x32xf32>
    %c160 = arith.constant 160 : index
    %c0_15 = arith.constant 0 : index
    %32 = vector.load %arg3[%c160, %c0_15] : memref<432x128xf32, #tpu.memory_space<vmem>>, vector<32x128xf32>
    %cst_16 = arith.constant dense<0.000000e+00> : vector<8x128xf32>
    %33 = tpu.matmul %31, %32, %cst_16 {dimension_numbers = #tpu.dot_dimension_numbers<[1], [0], [0], [1], [0, 0, 1, 1], [], []>} : vector<8x32xf32>, vector<32x128xf32>, vector<8x128xf32> -> vector<8x128xf32>
    %34 = arith.addf %30, %33 : vector<8x128xf32>
    %35 = vector.extract_strided_slice %11 {offsets = [48, 0], sizes = [8, 32], strides = [1, 1]} : vector<72x32xf32> to vector<8x32xf32>
    %c192 = arith.constant 192 : index
    %c0_17 = arith.constant 0 : index
    %36 = vector.load %arg3[%c192, %c0_17] : memref<432x128xf32, #tpu.memory_space<vmem>>, vector<32x128xf32>
    %cst_18 = arith.constant dense<0.000000e+00> : vector<8x128xf32>
    %37 = tpu.matmul %35, %36, %cst_18 {dimension_numbers = #tpu.dot_dimension_numbers<[1], [0], [0], [1], [0, 0, 1, 1], [], []>} : vector<8x32xf32>, vector<32x128xf32>, vector<8x128xf32> -> vector<8x128xf32>
    %38 = arith.addf %34, %37 : vector<8x128xf32>
    %39 = vector.extract_strided_slice %11 {offsets = [56, 0], sizes = [8, 32], strides = [1, 1]} : vector<72x32xf32> to vector<8x32xf32>
    %c224 = arith.constant 224 : index
    %c0_19 = arith.constant 0 : index
    %40 = vector.load %arg3[%c224, %c0_19] : memref<432x128xf32, #tpu.memory_space<vmem>>, vector<32x128xf32>
    %cst_20 = arith.constant dense<0.000000e+00> : vector<8x128xf32>
    %41 = tpu.matmul %39, %40, %cst_20 {dimension_numbers = #tpu.dot_dimension_numbers<[1], [0], [0], [1], [0, 0, 1, 1], [], []>} : vector<8x32xf32>, vector<32x128xf32>, vector<8x128xf32> -> vector<8x128xf32>
    %42 = arith.addf %38, %41 : vector<8x128xf32>
    %43 = vector.extract_strided_slice %11 {offsets = [64, 0], sizes = [8, 32], strides = [1, 1]} : vector<72x32xf32> to vector<8x32xf32>
    %c256 = arith.constant 256 : index
    %c0_21 = arith.constant 0 : index
    %44 = vector.load %arg3[%c256, %c0_21] : memref<432x128xf32, #tpu.memory_space<vmem>>, vector<32x128xf32>
    %cst_22 = arith.constant dense<0.000000e+00> : vector<8x128xf32>
    %45 = tpu.matmul %43, %44, %cst_22 {dimension_numbers = #tpu.dot_dimension_numbers<[1], [0], [0], [1], [0, 0, 1, 1], [], []>} : vector<8x32xf32>, vector<32x128xf32>, vector<8x128xf32> -> vector<8x128xf32>
    %46 = arith.addf %42, %45 : vector<8x128xf32>
    %c416 = arith.constant 416 : index
    %c0_23 = arith.constant 0 : index
    %47 = vector.load %arg3[%c416, %c0_23] : memref<432x128xf32, #tpu.memory_space<vmem>>, vector<1x128xf32>
    %48 = vector.broadcast %47 : vector<1x128xf32> to vector<8x128xf32>
    %49 = arith.addf %46, %48 : vector<8x128xf32>
    %cst_24 = arith.constant 0.000000e+00 : f32
    %50 = vector.broadcast %cst_24 : f32 to vector<8x128xf32>
    %51 = arith.maximumf %49, %50 : vector<8x128xf32>
    %52 = vector.extract_strided_slice %51 {offsets = [0, 0], sizes = [2, 128], strides = [1, 1]} : vector<8x128xf32> to vector<2x128xf32>
    %53 = vector.extract_strided_slice %51 {offsets = [2, 0], sizes = [2, 128], strides = [1, 1]} : vector<8x128xf32> to vector<2x128xf32>
    %54 = arith.maximumf %52, %53 : vector<2x128xf32>
    %55 = vector.extract_strided_slice %51 {offsets = [4, 0], sizes = [2, 128], strides = [1, 1]} : vector<8x128xf32> to vector<2x128xf32>
    %56 = vector.extract_strided_slice %51 {offsets = [6, 0], sizes = [2, 128], strides = [1, 1]} : vector<8x128xf32> to vector<2x128xf32>
    %57 = arith.maximumf %55, %56 : vector<2x128xf32>
    %58 = arith.maximumf %54, %57 : vector<2x128xf32>
    %c288 = arith.constant 288 : index
    %c0_25 = arith.constant 0 : index
    %59 = vector.load %arg3[%c288, %c0_25] : memref<432x128xf32, #tpu.memory_space<vmem>>, vector<128x128xf32>
    %cst_26 = arith.constant dense<0.000000e+00> : vector<2x128xf32>
    %60 = tpu.matmul %58, %59, %cst_26 {dimension_numbers = #tpu.dot_dimension_numbers<[1], [0], [0], [1], [0, 0, 1, 1], [], []>} : vector<2x128xf32>, vector<128x128xf32>, vector<2x128xf32> -> vector<2x128xf32>
    %c424 = arith.constant 424 : index
    %c0_27 = arith.constant 0 : index
    %61 = vector.load %arg3[%c424, %c0_27] : memref<432x128xf32, #tpu.memory_space<vmem>>, vector<1x128xf32>
    %62 = vector.broadcast %61 : vector<1x128xf32> to vector<2x128xf32>
    %63 = arith.addf %60, %62 : vector<2x128xf32>
    %c0_28 = arith.constant 0 : index
    %c0_29 = arith.constant 0 : index
    %64 = vector.load %arg4[%c0_28, %c0_29] : memref<2x128xf32, #tpu.memory_space<vmem>>, vector<2x128xf32>
    tpu.vector_store %arg4[%c0_28, %c0_29], %63 {strides = array<i32>} : memref<2x128xf32, #tpu.memory_space<vmem>>, vector<2x128xf32>,
    return
  }
  func.func @transform_0(%arg0: i32) -> (i32, i32) {
    %c0_i32 = arith.constant 0 : i32
    %c0_i32_0 = arith.constant 0 : i32
    %c0_i32_1 = arith.constant 0 : i32
    return %c0_i32, %c0_i32_0 : i32, i32
  }
  func.func @transform_1(%arg0: i32) -> (i32, i32) {
    %c0_i32 = arith.constant 0 : i32
    %c0_i32_0 = arith.constant 0 : i32
    %c0_i32_1 = arith.constant 0 : i32
    return %c0_i32, %c0_i32_0 : i32, i32
  }
  func.func @transform_2(%arg0: i32) -> (i32, i32) {
    %c0_i32 = arith.constant 0 : i32
    %c0_i32_0 = arith.constant 0 : i32
    %c0_i32_1 = arith.constant 0 : i32
    return %c0_i32, %c0_i32_0 : i32, i32
  }
  func.func @transform_3(%arg0: i32) -> (i32, i32) {
    %c0_i32 = arith.constant 0 : i32
    %c0_i32_0 = arith.constant 0 : i32
    %c0_i32_1 = arith.constant 0 : i32
    return %c0_i32, %c0_i32_0 : i32, i32
  }
}

</mosaic_0001>

<bundles_post_ra>
// kernel: my_network_forward.1
= control target key start
LH: loop header
LB: loop body
LE: loop exit
PB: predicated region body
PF: predicated region fallthrough
CT: control target
= control target key end

     0   :  { %s1049_s0 = inlined_call_operand.vmem [shape: f32[288,128], index: 0, kind: input, shape index: {}]   ;;  %s1050_s1 = inlined_call_operand.vmem [shape: f32[128,32], index: 1, kind: input, shape index: {}]   ;;  %s1051_s2 = inlined_call_operand.vmem [shape: f32[432,128], index: 2, kind: input, shape index: {}]   ;;  %s1052_s3 = inlined_call_operand.hbm [shape: f32[2,128], index: 3, kind: output, shape index: {}]  }
   0x1   :  { %v66_v0 = vld [vmem:[%s1050_s1 + $0x78] sm:$0xff]  ;;  %v65_v1 = vld [vmem:[%s1050_s1 + $0x70] sm:$0xff]  ;;  %v64_v2 = vld [vmem:[%s1050_s1 + $0x68] sm:$0xff] }
   0x2   :  { %67 = vmatpush.msra.mxu0 %v66_v0  ;;  %583 = vmatpush.msra.mxu2 %v66_v0  ;;  %v63_v3 = vld [vmem:[%s1050_s1 + $0x60] sm:$0xff]  ;;  %v62_v4 = vld [vmem:[%s1050_s1 + $0x58] sm:$0xff] }
   0x3   :  { %584 = vmatpush.msra.mxu3 %v66_v0  ;;  %582 = vmatpush.msra.mxu1 %v66_v0 }
   0x4   :  { %68 = vmatpush.msra.mxu0 %v65_v1  ;;  %586 = vmatpush.msra.mxu2 %v65_v1 }
   0x5   :  { %587 = vmatpush.msra.mxu3 %v65_v1  ;;  %585 = vmatpush.msra.mxu1 %v65_v1 }
   0x6   :  { %69 = vmatpush.msra.mxu0 %v64_v2  ;;  %589 = vmatpush.msra.mxu2 %v64_v2 }
   0x7   :  { %590 = vmatpush.msra.mxu3 %v64_v2  ;;  %588 = vmatpush.msra.mxu1 %v64_v2 }
   0x8   :  { %70 = vmatpush.msra.mxu0 %v63_v3  ;;  %592 = vmatpush.msra.mxu2 %v63_v3 }
   0x9   :  { %8 = vsyncpa [#allocation3], 0  ;;  %593 = vmatpush.msra.mxu3 %v63_v3  ;;  %v61_v5 = vld [vmem:[%s1050_s1 + $0x50] sm:$0xff]  ;;  %591 = vmatpush.msra.mxu1 %v63_v3  ;;  %v60_v6 = vld [vmem:[%s1050_s1 + $0x48] sm:$0xff]  ;;  %vm263_vm0 = vcmask 261120   ;;  %s659_s24 = smov [#allocation2]  }
   0xa   :  { %71 = vmatpush.msra.mxu0 %v62_v4  ;;  %595 = vmatpush.msra.mxu2 %v62_v4  ;;  %v59_v7 = vld [vmem:[%s1050_s1 + $0x40] sm:$0xff]  ;;  %v58_v8 = vld [vmem:[%s1050_s1 + $0x38] sm:$0xff]  ;;  %v57_v9 = vld [vmem:[%s1050_s1 + $0x30] sm:$0xff]  ;;  %s562_s25 = sshll.u32 %s659_s24, 4  ;;  %s564_s28 = sshll.u32 %s1052_s3, 4  ;;  %s563_s25 = int_to_ptr.vmem [resolvable:$true] %s562_s25  ;;  %s565_s28 = int_to_ptr.hbm [resolvable:$true] %s564_s28 }
   0xb   :  { %596 = vmatpush.msra.mxu3 %v62_v4  ;;  %594 = vmatpush.msra.mxu1 %v62_v4  ;;  %v56_v10 = vld [vmem:[%s1050_s1 + $0x28] sm:$0xff]  ;;  %v55_v11 = vld [vmem:[%s1050_s1 + $0x20] sm:$0xff]  ;;  %v54_v12 = vld [vmem:[%s1050_s1 + $0x18] sm:$0xff] }
   0xc   :  { %72 = vmatpush.msra.mxu0 %v61_v5  ;;  %598 = vmatpush.msra.mxu2 %v61_v5  ;;  %v53_v13 = vld [vmem:[%s1050_s1 + $0x10] sm:$0xff]  ;;  %v52_v14 = vld [vmem:[%s1050_s1 + $0x8] sm:$0xff]  ;;  %v51_v15 = vld [vmem:[%s1050_s1] sm:$0xff] }
   0xd   :  { %599 = vmatpush.msra.mxu3 %v61_v5  ;;  %597 = vmatpush.msra.mxu1 %v61_v5  ;;  %v15_v16 = vld [vmem:[%s1049_s0] sm:$0xff]  ;;  %v32_v17 = vld [vmem:[%s1049_s0 + $0x88] sm:$0xff]  ;;  %v41_v18 = vld [vmem:[%s1049_s0 + $0xd0] sm:$0xff] }
   0xe   :  { %73 = vmatpush.msra.mxu0 %v60_v6  ;;  %601 = vmatpush.msra.mxu2 %v60_v6  ;;  %v26_v19 = vld [vmem:[%s1049_s0 + $0x58] sm:$0xff]  ;;  %v16_v20 = vld [vmem:[%s1049_s0 + $0x8] sm:$0xff]  ;;  %v33_v21 = vld [vmem:[%s1049_s0 + $0x90] sm:$0xff] }
   0xf   :  { %602 = vmatpush.msra.mxu3 %v60_v6  ;;  %600 = vmatpush.msra.mxu1 %v60_v6  ;;  %v42_v22 = vld [vmem:[%s1049_s0 + $0xd8] sm:$0xff]  ;;  %v27_v23 = vld [vmem:[%s1049_s0 + $0x60] sm:$0xff]  ;;  %v17_v24 = vld [vmem:[%s1049_s0 + $0x10] sm:$0xff] }
  0x10   :  { %74 = vmatpush.msra.mxu0 %v59_v7  ;;  %604 = vmatpush.msra.mxu2 %v59_v7  ;;  %v34_v25 = vld [vmem:[%s1049_s0 + $0x98] sm:$0xff]  ;;  %v43_v26 = vld [vmem:[%s1049_s0 + $0xe0] sm:$0xff]  ;;  %v28_v27 = vld [vmem:[%s1049_s0 + $0x68] sm:$0xff] }
  0x11   :  { %605 = vmatpush.msra.mxu3 %v59_v7  ;;  %603 = vmatpush.msra.mxu1 %v59_v7  ;;  %v18_v28 = vld [vmem:[%s1049_s0 + $0x18] sm:$0xff]  ;;  %v35_v29 = vld [vmem:[%s1049_s0 + $0xa0] sm:$0xff]  ;;  %v44_v30 = vld [vmem:[%s1049_s0 + $0xe8] sm:$0xff] }
  0x12   :  { %75 = vmatpush.msra.mxu0 %v58_v8  ;;  %607 = vmatpush.msra.mxu2 %v58_v8  ;;  %v29_v31 = vld [vmem:[%s1049_s0 + $0x70] sm:$0xff]  ;;  %v19_v32 = vld [vmem:[%s1049_s0 + $0x20] sm:$0xff]  ;;  %v36_v33 = vld [vmem:[%s1049_s0 + $0xa8] sm:$0xff] }
  0x13   :  { %608 = vmatpush.msra.mxu3 %v58_v8  ;;  %606 = vmatpush.msra.mxu1 %v58_v8  ;;  %v45_v34 = vld [vmem:[%s1049_s0 + $0xf0] sm:$0xff]  ;;  %v30_v35 = vld [vmem:[%s1049_s0 + $0x78] sm:$0xff]  ;;  %v20_v36 = vld [vmem:[%s1049_s0 + $0x28] sm:$0xff] }
  0x14   :  { %76 = vmatpush.msra.mxu0 %v57_v9  ;;  %610 = vmatpush.msra.mxu2 %v57_v9  ;;  %v37_v37 = vld [vmem:[%s1049_s0 + $0xb0] sm:$0xff]  ;;  %v46_v38 = vld [vmem:[%s1049_s0 + $0xf8] sm:$0xff]  ;;  %v31_v39 = vld [vmem:[%s1049_s0 + $0x80] sm:$0xff] }
  0x15   :  { %611 = vmatpush.msra.mxu3 %v57_v9  ;;  %609 = vmatpush.msra.mxu1 %v57_v9  ;;  %v21_v40 = vld [vmem:[%s1049_s0 + $0x30] sm:$0xff]  ;;  %v38_v41 = vld [vmem:[%s1049_s0 + $0xb8] sm:$0xff]  ;;  %v47_v42 = vld [vmem:[%s1049_s0 + $0x100] sm:$0xff] }
  0x16   :  { %77 = vmatpush.msra.mxu0 %v56_v10  ;;  %613 = vmatpush.msra.mxu2 %v56_v10  ;;  %v22_v43 = vld [vmem:[%s1049_s0 + $0x38] sm:$0xff]  ;;  %v39_v44 = vld [vmem:[%s1049_s0 + $0xc0] sm:$0xff]  ;;  %v48_v45 = vld [vmem:[%s1049_s0 + $0x108] sm:$0xff] }
  0x17   :  { %614 = vmatpush.msra.mxu3 %v56_v10  ;;  %612 = vmatpush.msra.mxu1 %v56_v10  ;;  %v23_v46 = vld [vmem:[%s1049_s0 + $0x40] sm:$0xff]  ;;  %v40_v47 = vld [vmem:[%s1049_s0 + $0xc8] sm:$0xff]  ;;  %v49_v48 = vld [vmem:[%s1049_s0 + $0x110] sm:$0xff] }
  0x18   :  { %78 = vmatpush.msra.mxu0 %v55_v11  ;;  %616 = vmatpush.msra.mxu2 %v55_v11  ;;  %v24_v49 = vld [vmem:[%s1049_s0 + $0x48] sm:$0xff]  ;;  %v50_v50 = vld [vmem:[%s1049_s0 + $0x118] sm:$0xff]  ;;  %v25_v51 = vld [vmem:[%s1049_s0 + $0x50] sm:$0xff] }
  0x19   :  { %617 = vmatpush.msra.mxu3 %v55_v11  ;;  %615 = vmatpush.msra.mxu1 %v55_v11  ;;  %v262_v52 = vld [vmem:[%s1051_s2 + $0x38] sm:$0xff]  ;;  %v312_v55 = vld [vmem:[%s1051_s2 + $0x50] sm:$0xff]  ;;  %v311_v59 = vld [vmem:[%s1051_s2 + $0x48] sm:$0xff] }
  0x1a   :  { %79 = vmatpush.msra.mxu0 %v54_v12  ;;  %619 = vmatpush.msra.mxu2 %v54_v12  ;;  %v313_v53 = vld [vmem:[%s1051_s2 + $0x58] sm:$0xff]  ;;  %v261_v56 = vld [vmem:[%s1051_s2 + $0x30] sm:$0xff]  ;;  %v310_v60 = vld [vmem:[%s1051_s2 + $0x40] sm:$0xff] }
  0x1b   :  { %620 = vmatpush.msra.mxu3 %v54_v12  ;;  %618 = vmatpush.msra.mxu1 %v54_v12  ;;  %v258_v54 = vld [vmem:[%s1051_s2 + $0x18] sm:$0xff]  ;;  %v257_v57 = vld [vmem:[%s1051_s2 + $0x10] sm:$0xff]  ;;  %v339_v2 = vld [vmem:[%s1051_s2 + $0x68] sm:$0xff] }
  0x1c   :  { %80 = vmatpush.msra.mxu0 %v53_v13  ;;  %622 = vmatpush.msra.mxu2 %v53_v13  ;;  %v341_v61 = vld [vmem:[%s1051_s2 + $0x78] sm:$0xff]  ;;  %v340_v1 = vld [vmem:[%s1051_s2 + $0x70] sm:$0xff]  ;;  %v256_v3 = vld [vmem:[%s1051_s2 + $0x8] sm:$0xff] }
  0x1d   :  { %623 = vmatpush.msra.mxu3 %v53_v13  ;;  %621 = vmatpush.msra.mxu1 %v53_v13  ;;  %v338_v4 = vld [vmem:[%s1051_s2 + $0x60] sm:$0xff]  ;;  %v260_v5 = vld [vmem:[%s1051_s2 + $0x28] sm:$0xff]  ;;  %v397_v10 = vld [vmem:[%s1051_s2 + $0xb8] sm:$0xff] }
  0x1e   :  { %81 = vmatpush.msra.mxu0 %v52_v14  ;;  %625 = vmatpush.msra.mxu2 %v52_v14 }
  0x1f   :  { %626 = vmatpush.msra.mxu3 %v52_v14  ;;  %624 = vmatpush.msra.mxu1 %v52_v14  ;;  %v396_v14 = vld [vmem:[%s1051_s2 + $0xb0] sm:$0xff] }
  0x20   :  { %82 = vmatpush.msra.mxu0 %v51_v15  ;;  %628 = vmatpush.msra.mxu2 %v51_v15 }
  0x21   :  { %629 = vmatpush.msra.mxu3 %v51_v15  ;;  %83 = vmatmul.f32.vlgmr.msra.gmra.mxu0 %v15_v16 }
  0x22   :  { %134 = vmatmul.f32.vlgmr.msra.gmra.mxu2 %v32_v17  ;;  %161 = vmatmul.f32.vlgmr.msra.gmra.mxu3 %v41_v18  ;;  %v394_v17 = vld [vmem:[%s1051_s2 + $0xa0] sm:$0xff] }
  0x23   :  { %627 = vmatpush.msra.mxu1 %v51_v15  ;;  %279 = vmatpush.msrb.mxu0 %v262_v52  ;;  %v395_v15 = vld [vmem:[%s1051_s2 + $0xa8] sm:$0xff]  ;;  %v255_v18 = vld [vmem:[%s1051_s2] sm:$0xff]  ;;  %v368_v52 = vld [vmem:[%s1051_s2 + $0x90] sm:$0xff] }
  0x24   :  { %116 = vmatmul.f32.vlgmr.msra.gmra.mxu1 %v26_v19  ;;  %329 = vmatpush.msrb.mxu3 %v313_v53  ;;  %v479_v53 = vld [vmem:[%s1051_s2 + $0x108] sm:$0xff] }
  0x25   :  { %302 = vmatpush.msrb.mxu2 %v258_v54  ;;  %280 = vmatpush.msrb.mxu0 %v261_v56  ;;  %v367_v54 = vld [vmem:[%s1051_s2 + $0x88] sm:$0xff]  ;;  %v366_v56 = vld [vmem:[%s1051_s2 + $0x80] sm:$0xff] }
  0x26   :  { %330 = vmatpush.msrb.mxu3 %v312_v55  ;;  %357 = vmatpush.msrb.mxu1 %v341_v61  ;;  %v478_v55 = vld [vmem:[%s1051_s2 + $0x100] sm:$0xff] }
  0x27   :  { %303 = vmatpush.msrb.mxu2 %v257_v57  ;;  %281 = vmatpush.msrb.mxu0 %v260_v5 }
  0x28   :  { %331 = vmatpush.msrb.mxu3 %v311_v59  ;;  %358 = vmatpush.msrb.mxu1 %v340_v1 }
  0x29   :  { %86 = vmatmul.f32.gmra.mxu0 %v16_v20  ;;  %304 = vmatpush.msrb.mxu2 %v256_v3 }
  0x2a   :  { %137 = vmatmul.f32.gmra.mxu2 %v33_v21  ;;  %164 = vmatmul.f32.gmra.mxu3 %v42_v22  ;;  %v425_v21 = vld [vmem:[%s1051_s2 + $0xd8] sm:$0xff] }
  0x2b   :  { %332 = vmatpush.msrb.mxu3 %v310_v60  ;;  %359 = vmatpush.msrb.mxu1 %v339_v2 }
  0x2c   :  { %119 = vmatmul.f32.gmra.mxu1 %v27_v23  ;;  %305 = vmatpush.msrb.mxu2 %v255_v18 }
  0x2d   :  { %360 = vmatpush.msrb.mxu1 %v338_v4  ;;  %413 = vmatpush.msra.mxu3 %v397_v10 }
  0x2f   :  { %414 = vmatpush.msra.mxu3 %v396_v14  ;;  %441 = vmatpush.msra.mxu1 %v425_v21 }
  0x31   :  { %89 = vmatmul.f32.gmra.mxu0 %v17_v24  ;;  %415 = vmatpush.msra.mxu3 %v395_v15 }
  0x32   :  { %140 = vmatmul.f32.gmra.mxu2 %v34_v25  ;;  %167 = vmatmul.f32.gmra.mxu3 %v43_v26 }
  0x33   :  { %416 = vmatpush.msra.mxu3 %v394_v17 }
  0x34   :  { %122 = vmatmul.f32.gmra.mxu1 %v28_v27  ;;  %v424_v27 = vld [vmem:[%s1051_s2 + $0xd0] sm:$0xff] }
  0x35   :  { %442 = vmatpush.msra.mxu1 %v424_v27 }
  0x39   :  { %92 = vmatmul.f32.gmra.mxu0 %v18_v28 }
  0x3a   :  { %143 = vmatmul.f32.gmra.mxu2 %v35_v29  ;;  %170 = vmatmul.f32.gmra.mxu3 %v44_v30  ;;  %v423_v30 = vld [vmem:[%s1051_s2 + $0xc8] sm:$0xff] }
  0x3b   :  { %443 = vmatpush.msra.mxu1 %v423_v30 }
  0x3c   :  { %125 = vmatmul.f32.gmra.mxu1 %v29_v31 }
  0x41   :  { %95 = vmatmul.f32.gmra.mxu0 %v19_v32  ;;  %v259_v32 = vld [vmem:[%s1051_s2 + $0x20] sm:$0xff] }
  0x42   :  { %146 = vmatmul.f32.gmra.mxu2 %v36_v33  ;;  %173 = vmatmul.f32.gmra.mxu3 %v45_v34  ;;  %v422_v33 = vld [vmem:[%s1051_s2 + $0xc0] sm:$0xff] }
  0x43   :  { %282 = vmatpush.msrb.mxu0 %v259_v32  ;;  %444 = vmatpush.msra.mxu1 %v422_v33 }
  0x44   :  { %128 = vmatmul.f32.gmra.mxu1 %v30_v35 }
  0x49   :  { %98 = vmatmul.f32.gmra.mxu0 %v20_v36 }
  0x4a   :  { %149 = vmatmul.f32.gmra.mxu2 %v37_v37  ;;  %176 = vmatmul.f32.gmra.mxu3 %v46_v38 }
  0x4c   :  { %131 = vmatmul.f32.gmra.mxu1 %v31_v39 }
  0x51   :  { %101 = vmatmul.f32.gmra.mxu0 %v21_v40 }
  0x52   :  { %152 = vmatmul.f32.gmra.mxu2 %v38_v41  ;;  %179 = vmatmul.f32.gmra.mxu3 %v47_v42 }
  0x59   :  { %104 = vmatmul.f32.gmra.mxu0 %v22_v43 }
  0x5a   :  { %155 = vmatmul.f32.gmra.mxu2 %v39_v44  ;;  %182 = vmatmul.f32.gmra.mxu3 %v48_v45  ;;  %v481_v45 = vld [vmem:[%s1051_s2 + $0x118] sm:$0xff] }
  0x61   :  { %107 = vmatmul.f32.gmra.mxu0 %v23_v46 }
  0x62   :  { %158 = vmatmul.f32.gmra.mxu2 %v40_v47  ;;  %185 = vmatmul.f32.gmra.mxu3 %v49_v48 }
  0x69   :  { %110 = vmatmul.f32.gmra.mxu0 %v24_v49  ;;  %v369_v49 = vld [vmem:[%s1051_s2 + $0x98] sm:$0xff] }
  0x6a   :  { %188 = vmatmul.f32.gmra.mxu3 %v50_v50  ;;  %v480_v50 = vld [vmem:[%s1051_s2 + $0x110] sm:$0xff]  ;;  %385 = vmatpush.msra.mxu2 %v369_v49 }
  0x6c   :  { %386 = vmatpush.msra.mxu2 %v368_v52 }
  0x6e   :  { %387 = vmatpush.msra.mxu2 %v367_v54 }
  0x70   :  { %388 = vmatpush.msra.mxu2 %v366_v56 }
  0x71   :  { %113 = vmatmul.f32.gmra.mxu0 %v25_v51 }
  0x9e   :  { %v854_v58 = vpop.f32.mrf.mxu0 }
  0x9f   :  { %v192_v27 = vmax.f32 %v854_v58, 0.0 }
  0xa1   :  { %v117_v9 = vpop.f32.mrf.mxu1 }
  0xa2   :  { %v203_v20 = vmax.f32 %v117_v9, 0.0 }
  0xa5   :  { %v865_v62 = vpop.f32.mrf.mxu2  ;;  %v867_v63 = vpop.f32.mrf.mxu3 }
  0xa6   :  { %v869_v0 = vpop.f32.mrf.mxu0 }
  0xa9   :  { %v120_v16 = vpop.f32.mrf.mxu1 }
  0xaa   :  { %v204_v35 = vmax.f32 %v120_v16, 0.0 }
  0xad   :  { %v886_v6 = vpop.f32.mrf.mxu2  ;;  %v888_v7 = vpop.f32.mrf.mxu3 }
  0xae   :  { %v90_v8 = vpop.f32.mrf.mxu0 }
  0xaf   :  { %v194_v19 = vmax.f32 %v90_v8, 0.0 }
  0xb1   :  { %v230_v28 = vmax.f32 %v194_v19, %v203_v20  ;;  %v926_v36 = vpop.f32.mrf.mxu1 }
  0xb2   :  { %v205_v58 = vmax.f32 %v926_v36, 0.0  ;;  %v451_v36 = vld [vmem:[%s1051_s2 + $0xe8] sm:$0xff] }
  0xb5   :  { %v893_v11 = vpop.f32.mrf.mxu2  ;;  %v895_v12 = vpop.f32.mrf.mxu3 }
  0xb6   :  { %v93_v13 = vpop.f32.mrf.mxu0 }
  0xb7   :  { %v195_v34 = vmax.f32 %v93_v13, 0.0 }
  0xb9   :  { %v231_v42 = vmax.f32 %v195_v34, %v204_v35  ;;  %v126_v51 = vpop.f32.mrf.mxu1  ;;  %v453_v34 = vld [vmem:[%s1051_s2 + $0xf8] sm:$0xff] }
  0xba   :  { %v206_v59 = vmax.f32 %v126_v51, 0.0 }
  0xbd   :  { %v144_v22 = vpop.f32.mrf.mxu2  ;;  %v171_v23 = vpop.f32.mrf.mxu3 }
  0xbe   :  { %v212_v24 = vmax.f32 %v144_v22, 0.0  ;;  %v221_v25 = vmax.f32 %v171_v23, 0.0  ;;  %v912_v26 = vpop.f32.mrf.mxu0  ;;  %v210_v22 = vmax.f32 %v886_v6, 0.0  ;;  %v219_v23 = vmax.f32 %v888_v7, 0.0 }
  0xbf   :  { %v211_v6 = vmax.f32 %v893_v11, 0.0  ;;  %v220_v7 = vmax.f32 %v895_v12, 0.0  ;;  %v193_v11 = vmax.f32 %v869_v0, 0.0 }
  0xc0   :  { %v239_v29 = vmax.f32 %v212_v24, %v221_v25 }
  0xc1   :  { %v129_v8 = vpop.f32.mrf.mxu1 }
  0xc2   :  { %v248_v31 = vmax.f32 %v230_v28, %v239_v29  ;;  %v207_v13 = vmax.f32 %v129_v8, 0.0  ;;  %v237_v29 = vmax.f32 %v210_v22, %v219_v23  ;;  %v526_v8 = vld [vmem:[%s1051_s2 + $0x160] sm:$0xff] }
  0xc4   :  { %575 = vmatmul.msk.f32.vlgmr.msrb.gmra.mxu3 %vm263_vm0, %v248_v31 }
  0xc5   :  { %v147_v37 = vpop.f32.mrf.mxu2  ;;  %v174_v38 = vpop.f32.mrf.mxu3  ;;  %497 = vmatpush.msrb.mxu3 %v481_v45 }
  0xc6   :  { %v213_v39 = vmax.f32 %v147_v37, 0.0  ;;  %v222_v40 = vmax.f32 %v174_v38, 0.0  ;;  %v99_v41 = vpop.f32.mrf.mxu0  ;;  %v196_v37 = vmax.f32 %v912_v26, 0.0 }
  0xc7   :  { %498 = vmatpush.msrb.mxu3 %v480_v50  ;;  %v197_v57 = vmax.f32 %v99_v41, 0.0  ;;  %v218_v41 = vmax.f32 %v867_v63, 0.0  ;;  %v450_v63 = vld [vmem:[%s1051_s2 + $0xe0] sm:$0xff] }
  0xc8   :  { %v240_v43 = vmax.f32 %v213_v39, %v222_v40  ;;  %v452_v39 = vld [vmem:[%s1051_s2 + $0xf0] sm:$0xff]  ;;  %v209_v40 = vmax.f32 %v865_v62, 0.0 }
  0xc9   :  { %499 = vmatpush.msrb.mxu3 %v479_v53  ;;  %v233_v4 = vmax.f32 %v197_v57, %v206_v59  ;;  %v132_v49 = vpop.f32.mrf.mxu1 }
  0xca   :  { %v249_v44 = vmax.f32 %v231_v42, %v240_v43 }
  0xcb   :  { %500 = vmatpush.msrb.mxu3 %v478_v55  ;;  %v208_v55 = vmax.f32 %v132_v49, 0.0 }
  0xcc   :  { %576 = vmatmul.msk.f32.vlgmr.msrb.gmra.mxu1 %vm263_vm0, %v249_v44 }
  0xcd   :  { %v933_v46 = vpop.f32.mrf.mxu2  ;;  %v935_v47 = vpop.f32.mrf.mxu3 }
  0xce   :  { %v102_v48 = vpop.f32.mrf.mxu0  ;;  %v214_v31 = vmax.f32 %v933_v46, 0.0  ;;  %v223_v32 = vmax.f32 %v935_v47, 0.0  ;;  %v238_v47 = vmax.f32 %v211_v6, %v220_v7 }
  0xcf   :  { %v198_v10 = vmax.f32 %v102_v48, 0.0  ;;  %v232_v48 = vmax.f32 %v196_v37, %v205_v58 }
  0xd0   :  { %v241_v12 = vmax.f32 %v214_v31, %v223_v32 }
  0xd1   :  { %v234_v19 = vmax.f32 %v198_v10, %v207_v13  ;;  %v524_v10 = vld [vmem:[%s1051_s2 + $0x150] sm:$0xff]  ;;  %v523_v13 = vld [vmem:[%s1051_s2 + $0x148] sm:$0xff] }
  0xd2   :  { %v250_v0 = vmax.f32 %v232_v48, %v241_v12 }
  0xd5   :  { %v153_v60 = vpop.f32.mrf.mxu2  ;;  %v180_v61 = vpop.f32.mrf.mxu3 }
  0xd6   :  { %v215_v1 = vmax.f32 %v153_v60, 0.0  ;;  %v224_v2 = vmax.f32 %v180_v61, 0.0  ;;  %v958_v3 = vpop.f32.mrf.mxu0  ;;  %v533_v60 = vld [vmem:[%s1051_s2 + $0x198] sm:$0xff]  ;;  %v532_v61 = vld [vmem:[%s1051_s2 + $0x190] sm:$0xff] }
  0xd7   :  { %v199_v54 = vmax.f32 %v958_v3, 0.0  ;;  %536 = vmatpush.msrb.mxu1 %v533_v60  ;;  %v529_v3 = vld [vmem:[%s1051_s2 + $0x178] sm:$0xff] }
  0xd8   :  { %v242_v5 = vmax.f32 %v215_v1, %v224_v2  ;;  %v531_v1 = vld [vmem:[%s1051_s2 + $0x188] sm:$0xff]  ;;  %v530_v2 = vld [vmem:[%s1051_s2 + $0x180] sm:$0xff] }
  0xd9   :  { %v235_v57 = vmax.f32 %v199_v54, %v208_v55  ;;  %537 = vmatpush.msrb.mxu1 %v532_v61 }
  0xda   :  { %v251_v9 = vmax.f32 %v233_v4, %v242_v5  ;;  %v528_v4 = vld [vmem:[%s1051_s2 + $0x170] sm:$0xff]  ;;  %v527_v5 = vld [vmem:[%s1051_s2 + $0x168] sm:$0xff] }
  0xdb   :  { %538 = vmatpush.msrb.mxu1 %v531_v1 }
  0xdc   :  { %578 = vmatmul.msk.f32.vlgmr.msra.gmra.mxu3 %vm263_vm0, %v251_v9  ;;  %v525_v9 = vld [vmem:[%s1051_s2 + $0x158] sm:$0xff] }
  0xdd   :  { %v156_v14 = vpop.f32.mrf.mxu2  ;;  %v183_v15 = vpop.f32.mrf.mxu3  ;;  %539 = vmatpush.msrb.mxu1 %v530_v2 }
  0xde   :  { %v216_v16 = vmax.f32 %v156_v14, 0.0  ;;  %v225_v17 = vmax.f32 %v183_v15, 0.0  ;;  %v108_v18 = vpop.f32.mrf.mxu0  ;;  %v522_v14 = vld [vmem:[%s1051_s2 + $0x140] sm:$0xff]  ;;  %v521_v15 = vld [vmem:[%s1051_s2 + $0x138] sm:$0xff] }
  0xdf   :  { %v200_v35 = vmax.f32 %v108_v18, 0.0  ;;  %540 = vmatpush.msrb.mxu1 %v529_v3  ;;  %v518_v18 = vld [vmem:[%s1051_s2 + $0x120] sm:$0xff] }
  0xe0   :  { %v243_v20 = vmax.f32 %v216_v16, %v225_v17  ;;  %v520_v16 = vld [vmem:[%s1051_s2 + $0x130] sm:$0xff]  ;;  %v519_v17 = vld [vmem:[%s1051_s2 + $0x128] sm:$0xff] }
  0xe1   :  { %v236_v44 = vmax.f32 %v200_v35, %v209_v40  ;;  %541 = vmatpush.msrb.mxu1 %v528_v4  ;;  %v631_v35 = vld [vmem:[%s1051_s2 + $0x1a0] ss:$0 sm:$0xff] }
  0xe2   :  { %v252_v21 = vmax.f32 %v234_v19, %v243_v20 }
  0xe3   :  { %542 = vmatpush.msrb.mxu1 %v527_v5 }
  0xe4   :  { %579 = vmatmul.msk.f32.vlgmr.msra.gmra.mxu1 %vm263_vm0, %v252_v21 }
  0xe5   :  { %v186_v24 = vpop.f32.mrf.mxu3  ;;  %v159_v45 = vpop.f32.mrf.mxu2  ;;  %543 = vmatpush.msrb.mxu1 %v526_v8 }
  0xe6   :  { %v111_v25 = vpop.f32.mrf.mxu0  ;;  %v217_v51 = vmax.f32 %v159_v45, 0.0  ;;  %v226_v52 = vmax.f32 %v186_v24, 0.0 }
  0xe7   :  { %v201_v28 = vmax.f32 %v111_v25, 0.0  ;;  %544 = vmatpush.msrb.mxu1 %v525_v9 }
  0xe8   :  { %v244_v56 = vmax.f32 %v217_v51, %v226_v52 }
  0xe9   :  { %v228_v30 = vmax.f32 %v192_v27, %v201_v28  ;;  %545 = vmatpush.msrb.mxu1 %v524_v10 }
  0xea   :  { %v253_v59 = vmax.f32 %v235_v57, %v244_v56 }
  0xeb   :  { %v246_v33 = vmax.f32 %v228_v30, %v237_v29  ;;  %546 = vmatpush.msrb.mxu1 %v523_v13 }
  0xed   :  { %v189_v38 = vpop.f32.mrf.mxu3  ;;  %574 = vmatmul.msk.f32.vlgmr.msrb.gmra.mxu2 %vm263_vm0, %v246_v33  ;;  %547 = vmatpush.msrb.mxu1 %v522_v14 }
  0xee   :  { %v227_v42 = vmax.f32 %v189_v38, 0.0  ;;  %v114_v43 = vpop.f32.mrf.mxu0  ;;  %469 = vmatpush.msrb.mxu2 %v453_v34 }
  0xef   :  { %v202_v26 = vmax.f32 %v114_v43, 0.0  ;;  %548 = vmatpush.msrb.mxu1 %v521_v15 }
  0xf0   :  { %v245_v46 = vmax.f32 %v218_v41, %v227_v42  ;;  %470 = vmatpush.msrb.mxu2 %v452_v39  ;;  %v632_v42 = vld [vmem:[%s1051_s2 + $0x1a8] ss:$0 sm:$0xff] }
  0xf1   :  { %v229_v62 = vmax.f32 %v193_v11, %v202_v26  ;;  %549 = vmatpush.msrb.mxu1 %v520_v16 }
  0xf2   :  { %v254_v50 = vmax.f32 %v236_v44, %v245_v46  ;;  %471 = vmatpush.msrb.mxu2 %v451_v36 }
  0xf3   :  { %v247_v53 = vmax.f32 %v229_v62, %v238_v47  ;;  %550 = vmatpush.msrb.mxu1 %v519_v17 }
  0xf4   :  { %581 = vmatmul.msk.f32.vlgmr.msrb.gmra.mxu3 %vm263_vm0, %v254_v50  ;;  %472 = vmatpush.msrb.mxu2 %v450_v63 }
  0xf5   :  { %573 = vmatmul.msk.f32.vlgmr.msrb.gmra.mxu0 %vm263_vm0, %v247_v53  ;;  %577 = vmatmul.msk.f32.vlgmr.msra.gmra.mxu2 %vm263_vm0, %v250_v0 }
  0xf6   :  { %551 = vmatpush.msrb.mxu1 %v518_v18 }
  0xfd   :  { %580 = vmatmul.msk.f32.vlgmr.msrb.gmra.mxu2 %vm263_vm0, %v253_v59 }
 0x147   :  { %v334_v20 = vpop.f32.mrf.mxu3 }
 0x149   :  { %v362_v24 = vpop.f32.mrf.mxu1 }
 0x15f   :  { %v418_v29 = vpop.f32.mrf.mxu3 }
 0x161   :  { %v446_v31 = vpop.f32.mrf.mxu1 }
 0x170   :  { %v307_v19 = vpop.f32.mrf.mxu2 }
 0x172   :  { %v284_v21 = vpop.f32.mrf.mxu0 }
 0x173   :  { %v308_v22 = vadd.f32 %v307_v19, %v284_v21 }
 0x175   :  { %v337_v23 = vadd.f32 %v334_v20, %v308_v22 }
 0x177   :  { %v365_v25 = vadd.f32 %v362_v24, %v337_v23  ;;  %v502_v6 = vpop.f32.mrf.mxu3 }
 0x178   :  { %v390_v27 = vpop.f32.mrf.mxu2 }
 0x179   :  { %v393_v28 = vadd.f32 %v390_v27, %v365_v25 }
 0x17b   :  { %v421_v30 = vadd.f32 %v418_v29, %v393_v28 }
 0x17d   :  { %v449_v32 = vadd.f32 %v446_v31, %v421_v30 }
 0x180   :  { %v474_v33 = vpop.f32.mrf.mxu2 }
 0x181   :  { %v477_v34 = vadd.f32 %v474_v33, %v449_v32 }
 0x183   :  { %v505_v7 = vadd.f32 %v502_v6, %v477_v34 }
 0x185   :  { %v508_v37 = vadd.f32 %v631_v35, %v505_v7 }
 0x187   :  { %v509_v58 = vmax.f32 %v508_v37, 0.0 }
 0x189   :  { %v511_v38 = vrot.slane %v509_v58, 2 }
 0x18b   :  { %v513_v39 = vmax.f32 %v509_v58, %v511_v38 }
 0x18d   :  { %v515_v40 = vrot.slane %v513_v39, 4 }
 0x18f   :  { %v517_v41 = vmax.f32 %v513_v39, %v515_v40 }
 0x191   :  { %552 = vmatmul.f32.vlgmr.msrb.gmra.mxu1 %v517_v41 }
 0x20e   :  { %v553_v43 = vpop.f32.mrf.mxu1 }
 0x20f   :  { %v554_v11 = vadd.f32 %v632_v42, %v553_v43 }
 0x211   :  { %556 = vst [vmem:[#allocation2] sm:$0x3] %v554_v11 }
 0x212   :  { %567 = dma.vmem_to_hbm [thread:$0]  %s563_s25, 32, %s565_s28, [#allocation3]  }
 0x213   :  { %657 = dma.done.wait [#allocation3], 32  }
 0x214   :  { %658 = vsyncadd [#allocation3], 4294967264 }
 0x215   :  { %572 = vsyncpa [#allocation3], 1 }

</bundles_post_ra>
